<compile_context>
chip_gen: v7x
topology: tpu7x:2x2x1
jax: 0.10.0
libtpu: 0.0.40
codegen_flags: <defaults>
</compile_context>

<pallas_src>
import jax
import jax.numpy as jnp
from jax.experimental import pallas as pl
from jax.experimental.pallas import tpu as pltpu

# Problem sizes (small, consistent with the conv forward).
N, C_IN, H, W = 2, 4, 16, 16
C_OUT, KH, KW = 8, 3, 3
H_OUT, W_OUT = H - KH + 1, W - KW + 1      # valid conv: 14 x 14

ROWS = N * H_OUT * W_OUT                   # 392  (multiple of 8 sublanes)
K_DIM = KH * KW * C_IN                     # 36   (contraction length)
K_PAD = 48                                 # padded to bf16 sublane tile (16)
LANES = 128                                # lane-dense padded output width


def _matmul_bias_relu_kernel(p_ref, w_ref, b_ref, o_ref):
    """One MXU matmul over the whole batch + fused bias + ReLU (gridless).

    p_ref: (ROWS, K_PAD)   bf16 im2col patches, rows = (n, h_out, w_out)
    w_ref: (K_PAD, LANES)  bf16 compact weights, C_OUT zero-padded to 128 lanes
    b_ref: (1, LANES)      f32 bias, zero-padded to 128 lanes
    o_ref: (ROWS, LANES)   f32 lane-dense output (padding sliced off outside)
    """
    acc = jnp.dot(p_ref[...], w_ref[...], preferred_element_type=jnp.float32)
    o_ref[...] = jnp.maximum(acc + b_ref[...], 0.0).astype(o_ref.dtype)


def _conv_matmul_pallas(patches_2d, w_mat, b_row):
    vmem_spec = pl.BlockSpec(memory_space=pltpu.MemorySpace.VMEM)
    return pl.pallas_call(
        _matmul_bias_relu_kernel,
        out_shape=jax.ShapeDtypeStruct((ROWS, LANES), jnp.float32),
        in_specs=[vmem_spec, vmem_spec, vmem_spec],
        out_specs=vmem_spec,
        cost_estimate=pl.CostEstimate(
            flops=2 * ROWS * K_PAD * LANES,
            transcendentals=0,
            bytes_accessed=(ROWS * K_PAD * 2 + K_PAD * LANES * 2
                            + LANES * 4 + ROWS * LANES * 4),
        ),
    )(patches_2d, w_mat, b_row)


@jax.jit
def _conv2d_relu_forward(x_nchw, w_mat, b_row):
    """Conv2d (stride 1, valid) + bias + ReLU. NCHW in / NCHW out, f32 result."""
    # Layout glue (pure data movement, fused by XLA around the Pallas call).
    x_nhwc = jnp.transpose(x_nchw, (0, 2, 3, 1)).astype(jnp.bfloat16)  # (N,H,W,Cin)
    slabs = [x_nhwc[:, kh:kh + H_OUT, kw:kw + W_OUT, :]
             for kh in range(KH) for kw in range(KW)]
    patches = jnp.concatenate(slabs, axis=-1)                          # (N,Ho,Wo,36)
    patches_2d = patches.reshape(ROWS, K_DIM)                          # (392, 36)
    patches_2d = jnp.pad(patches_2d, ((0, 0), (0, K_PAD - K_DIM)))     # (392, 48)

    out = _conv_matmul_pallas(patches_2d, w_mat, b_row)                # (392, 128)

    out = out[:, :C_OUT].reshape(N, H_OUT, W_OUT, C_OUT)
    return jnp.transpose(out, (0, 3, 1, 2))                            # back to NCHW


class PallasConvReluModule:
    """Synthetic stand-in for the compiled tvm.runtime.Module."""

    def __init__(self, w_oihw, b):
        # Pack weights/bias ONCE: (Cout,Cin,KH,KW) -> (KH*KW*Cin, Cout),
        # sublane-pad K 36->48, lane-pad Cout 8->128, cast weights to bf16.
        w_kc = jnp.transpose(w_oihw, (2, 3, 1, 0)).reshape(K_DIM, C_OUT)
        w_mat = jnp.zeros((K_PAD, LANES), jnp.float32)
        w_mat = w_mat.at[:K_DIM, :C_OUT].set(w_kc.astype(jnp.float32))
        self.w_mat = w_mat.astype(jnp.bfloat16)
        self.b_row = jnp.zeros((1, LANES), jnp.float32).at[:, :C_OUT].set(
            b.astype(jnp.float32))

    def forward(self, inputs):
        (x,) = inputs
        # TVM graph executors return a list/tuple of outputs.
        return (_conv2d_relu_forward(x, self.w_mat, self.b_row),)


class GraphExecutorFactoryWrapper:
    """Faithful port of the PyTorch wrapper's forward semantics."""

    def __init__(self, module):
        self.inner_module = module

    def forward(self, *inputs):
        ret = self.inner_module.forward(inputs)
        if len(ret) == 1:
            return ret[0]
        return ret

    __call__ = forward


if __name__ == "__main__":
    key = jax.random.PRNGKey(0)
    kx, kw, kb = jax.random.split(key, 3)

    x = jax.random.normal(kx, (N, C_IN, H, W), dtype=jnp.float32)        # NCHW
    w = jax.random.normal(kw, (C_OUT, C_IN, KH, KW), dtype=jnp.float32) * 0.1
    b = jax.random.normal(kb, (C_OUT,), dtype=jnp.float32) * 0.1

    wrapper = GraphExecutorFactoryWrapper(PallasConvReluModule(w, b))
    out = wrapper(x)
    out = jax.block_until_ready(out)

    # Pure-JAX f32 reference for correctness (bf16 MXU operands -> relaxed tol).
    ref = jax.lax.conv_general_dilated(
        x, w, window_strides=(1, 1), padding="VALID",
        dimension_numbers=("NCHW", "OIHW", "NCHW"))
    ref = jnp.maximum(ref + b[None, :, None, None], 0.0)

    assert out.shape == (N, C_OUT, H_OUT, W_OUT)
    err = float(jnp.max(jnp.abs(out - ref)))
    assert err < 5e-2, f"mismatch vs reference: max abs err {err}"

    print("KERNEL_OK")
</pallas_src>

<mosaic_0001>
module attributes {stable_mosaic.version = 11 : i64} {
  func.func @_matmul_bias_relu_kernel(%arg0: memref<392x48xbf16, #tpu.memory_space<vmem>>, %arg1: memref<48x128xbf16, #tpu.memory_space<vmem>>, %arg2: memref<1x128xf32, #tpu.memory_space<vmem>>, %arg3: memref<392x128xf32, #tpu.memory_space<vmem>>) attributes {dimension_semantics = [], scalar_prefetch = 0 : i64, scratch_operands = 0 : i64, tpu.core_type = #tpu.core_type<tc>} {
    %c0 = arith.constant 0 : index
    %c0_0 = arith.constant 0 : index
    %0 = vector.load %arg0[%c0, %c0_0] : memref<392x48xbf16, #tpu.memory_space<vmem>>, vector<392x48xbf16>
    %c0_1 = arith.constant 0 : index
    %c0_2 = arith.constant 0 : index
    %1 = vector.load %arg1[%c0_1, %c0_2] : memref<48x128xbf16, #tpu.memory_space<vmem>>, vector<48x128xbf16>
    %cst = arith.constant dense<0.000000e+00> : vector<392x128xf32>
    %2 = tpu.matmul %0, %1, %cst {dimension_numbers = #tpu.dot_dimension_numbers<[1], [0], [0], [1], [0, 0, 1, 1], [], []>} : vector<392x48xbf16>, vector<48x128xbf16>, vector<392x128xf32> -> vector<392x128xf32>
    %c0_3 = arith.constant 0 : index
    %c0_4 = arith.constant 0 : index
    %3 = vector.load %arg2[%c0_3, %c0_4] : memref<1x128xf32, #tpu.memory_space<vmem>>, vector<1x128xf32>
    %4 = vector.broadcast %3 : vector<1x128xf32> to vector<392x128xf32>
    %5 = arith.addf %2, %4 : vector<392x128xf32>
    %cst_5 = arith.constant 0.000000e+00 : f32
    %6 = vector.broadcast %cst_5 : f32 to vector<392x128xf32>
    %7 = arith.maximumf %5, %6 : vector<392x128xf32>
    %c0_6 = arith.constant 0 : index
    %c0_7 = arith.constant 0 : index
    %8 = vector.load %arg3[%c0_6, %c0_7] : memref<392x128xf32, #tpu.memory_space<vmem>>, vector<392x128xf32>
    tpu.vector_store %arg3[%c0_6, %c0_7], %7 {strides = array<i32>} : memref<392x128xf32, #tpu.memory_space<vmem>>, vector<392x128xf32>,
    return
  }
}

</mosaic_0001>

<bundles_post_ra>
// kernel: _conv2d_relu_forward.1
= control target key start
LH: loop header
LB: loop body
LE: loop exit
PB: predicated region body
PF: predicated region fallthrough
CT: control target
= control target key end

     0   :  { %v852_v0 = vmov 0.0   ;;  %vm853_vm0 = vmmov 0   ;;  %vm218_vm1 = vcmask 392192   ;;  %s1240_s1 = inlined_call_operand.vmem [shape: bf16[48,128], index: 1, kind: input, shape index: {}]   ;;  %s1241_s0 = inlined_call_operand.vmem [shape: bf16[392,48], index: 0, kind: input, shape index: {}]   ;;  %s1242_s2 = inlined_call_operand.vmem [shape: f32[1,128], index: 2, kind: input, shape index: {}]   ;;  %s1243_s3 = inlined_call_operand.vmem [shape: f32[392,128], index: 3, kind: output, shape index: {}]  }
   0x1   :  { %710 = vmatprep.subr.bf16.mxu0 %v852_v0  ;;  %v824_v1 = vld [vmem:[%s1240_s1] sm:$0xff]   ;;  %816 = vmatprep.subr.bf16.mxu1 %v852_v0  ;;  %v825_v2 = vld [vmem:[%s1240_s1 + $0x8] sm:$0xff]   ;;  %v826_v3 = vld [vmem:[%s1240_s1 + $0x10] sm:$0xff]  }
   0x2   :  { %716 = vmatprep.mubr.msk.bf16.mxu0 %vm853_vm0, %v852_v0  ;;  %768 = vmatprep.mubr.msk.bf16.mxu1 %vm853_vm0, %v852_v0  ;;  %v827_v4 = vld [vmem:[%s1241_s0] sm:$0xff]   ;;  %v828_v5 = vld [vmem:[%s1241_s0 + $0x68] sm:$0xff]   ;;  %v830_v7 = vld [vmem:[%s1241_s0 + $0x70] sm:$0xff]  }
   0x3   :  { %711 = vmatpush3.bf16.msra.mxu0 %v824_v1  ;;  %819 = vmatpush3.bf16.msra.mxu1 %v824_v1  ;;  %v829_v6 = vld [vmem:[%s1241_s0 + $0x8] sm:$0xff]   ;;  %v831_v8 = vld [vmem:[%s1241_s0 + $0x10] sm:$0xff]   ;;  %v832_v9 = vld [vmem:[%s1241_s0 + $0x78] sm:$0xff]  }
   0x4   :  { %712 = vmatprep.subr.bf16.mxu0 %v852_v0  ;;  %817 = vmatprep.subr.bf16.mxu1 %v852_v0  ;;  %v833_v10 = vld [vmem:[%s1241_s0 + $0x18] sm:$0xff]   ;;  %v834_v11 = vld [vmem:[%s1241_s0 + $0x80] sm:$0xff]   ;;  %v836_v13 = vld [vmem:[%s1241_s0 + $0x88] sm:$0xff]  }
   0x5   :  { %v835_v12 = vld [vmem:[%s1241_s0 + $0x20] sm:$0xff]   ;;  %v837_v14 = vld [vmem:[%s1241_s0 + $0x28] sm:$0xff]   ;;  %v838_v15 = vld [vmem:[%s1241_s0 + $0x90] sm:$0xff]  }
   0x6   :  { %v839_v16 = vld [vmem:[%s1241_s0 + $0x30] sm:$0xff]   ;;  %v840_v17 = vld [vmem:[%s1241_s0 + $0x98] sm:$0xff]   ;;  %v842_v19 = vld [vmem:[%s1241_s0 + $0xa0] sm:$0xff]  }
   0x7   :  { %713 = vmatpush3.bf16.msra.mxu0 %v825_v2  ;;  %820 = vmatpush3.bf16.msra.mxu1 %v825_v2  ;;  %v841_v18 = vld [vmem:[%s1241_s0 + $0x38] sm:$0xff]   ;;  %v843_v20 = vld [vmem:[%s1241_s0 + $0x40] sm:$0xff]   ;;  %v844_v21 = vld [vmem:[%s1241_s0 + $0xa8] sm:$0xff]  }
   0x8   :  { %714 = vmatprep.subr.bf16.mxu0 %v852_v0  ;;  %818 = vmatprep.subr.bf16.mxu1 %v852_v0  ;;  %v845_v22 = vld [vmem:[%s1241_s0 + $0x48] sm:$0xff]   ;;  %v846_v23 = vld [vmem:[%s1241_s0 + $0xb0] sm:$0xff]   ;;  %v848_v25 = vld [vmem:[%s1241_s0 + $0xb8] sm:$0xff]  }
   0x9   :  { %v847_v24 = vld [vmem:[%s1241_s0 + $0x50] sm:$0xff]   ;;  %v849_v26 = vld [vmem:[%s1241_s0 + $0x58] sm:$0xff]   ;;  %v850_v27 = vld [vmem:[%s1241_s0 + $0xc0] ss:$0 sps:$4 sm:$0xff]  }
   0xa   :  { %v851_v28 = vld [vmem:[%s1241_s0 + $0x60] sm:$0xff]  }
   0xb   :  { %715 = vmatpush3.bf16.msra.mxu0 %v826_v3  ;;  %821 = vmatpush3.bf16.msra.mxu1 %v826_v3  ;;  %v1042_v29 = vld [vmem:[%s1242_s2] ss:$0 sm:$0xff] }
   0xe   :  { %717 = vmatmul.mubr.msk.bf16.vlgmr.msra.gmra.mrb[0].mxu0 %vm218_vm1, %v827_v4  ;;  %769 = vmatmul.mubr.msk.bf16.vlgmr.msra.gmra.mrb[0].mxu1 %vm218_vm1, %v828_v5 }
   0xf   :  { %720 = vmatprep.mubr.msk.bf16.mxu0 %vm853_vm0, %v852_v0  ;;  %772 = vmatprep.mubr.msk.bf16.mxu1 %vm853_vm0, %v852_v0 }
  0x16   :  { %721 = vmatmul.mubr.msk.bf16.gmra.mrb[4].mxu0 %vm218_vm1, %v829_v6  ;;  %773 = vmatmul.mubr.msk.bf16.gmra.mrb[4].mxu1 %vm218_vm1, %v830_v7 }
  0x17   :  { %724 = vmatprep.mubr.msk.bf16.mxu0 %vm853_vm0, %v852_v0  ;;  %776 = vmatprep.mubr.msk.bf16.mxu1 %vm853_vm0, %v852_v0 }
  0x1e   :  { %725 = vmatmul.mubr.msk.bf16.gmra.mrb[8].mxu0 %vm218_vm1, %v831_v8  ;;  %777 = vmatmul.mubr.msk.bf16.gmra.mrb[8].mxu1 %vm218_vm1, %v832_v9 }
  0x1f   :  { %728 = vmatprep.mubr.msk.bf16.mxu0 %vm853_vm0, %v852_v0  ;;  %780 = vmatprep.mubr.msk.bf16.mxu1 %vm853_vm0, %v852_v0 }
  0x26   :  { %729 = vmatmul.mubr.msk.bf16.gmra.mrb[12].mxu0 %vm218_vm1, %v833_v10  ;;  %781 = vmatmul.mubr.msk.bf16.gmra.mrb[12].mxu1 %vm218_vm1, %v834_v11 }
  0x27   :  { %732 = vmatprep.mubr.msk.bf16.mxu0 %vm853_vm0, %v852_v0  ;;  %784 = vmatprep.mubr.msk.bf16.mxu1 %vm853_vm0, %v852_v0 }
  0x2e   :  { %733 = vmatmul.mubr.msk.bf16.gmra.mrb[16].mxu0 %vm218_vm1, %v835_v12  ;;  %785 = vmatmul.mubr.msk.bf16.gmra.mrb[16].mxu1 %vm218_vm1, %v836_v13 }
  0x2f   :  { %736 = vmatprep.mubr.msk.bf16.mxu0 %vm853_vm0, %v852_v0  ;;  %788 = vmatprep.mubr.msk.bf16.mxu1 %vm853_vm0, %v852_v0 }
  0x36   :  { %737 = vmatmul.mubr.msk.bf16.gmra.mrb[20].mxu0 %vm218_vm1, %v837_v14  ;;  %789 = vmatmul.mubr.msk.bf16.gmra.mrb[20].mxu1 %vm218_vm1, %v838_v15 }
  0x37   :  { %740 = vmatprep.mubr.msk.bf16.mxu0 %vm853_vm0, %v852_v0  ;;  %792 = vmatprep.mubr.msk.bf16.mxu1 %vm853_vm0, %v852_v0 }
  0x3e   :  { %741 = vmatmul.mubr.msk.bf16.gmra.mrb[24].mxu0 %vm218_vm1, %v839_v16  ;;  %793 = vmatmul.mubr.msk.bf16.gmra.mrb[24].mxu1 %vm218_vm1, %v840_v17 }
  0x3f   :  { %744 = vmatprep.mubr.msk.bf16.mxu0 %vm853_vm0, %v852_v0  ;;  %796 = vmatprep.mubr.msk.bf16.mxu1 %vm853_vm0, %v852_v0 }
  0x46   :  { %745 = vmatmul.mubr.msk.bf16.gmra.mrb[28].mxu0 %vm218_vm1, %v841_v18  ;;  %797 = vmatmul.mubr.msk.bf16.gmra.mrb[28].mxu1 %vm218_vm1, %v842_v19 }
  0x47   :  { %748 = vmatprep.mubr.msk.bf16.mxu0 %vm853_vm0, %v852_v0  ;;  %800 = vmatprep.mubr.msk.bf16.mxu1 %vm853_vm0, %v852_v0 }
  0x4e   :  { %749 = vmatmul.mubr.msk.bf16.gmra.mrb[32].mxu0 %vm218_vm1, %v843_v20  ;;  %801 = vmatmul.mubr.msk.bf16.gmra.mrb[32].mxu1 %vm218_vm1, %v844_v21 }
  0x4f   :  { %752 = vmatprep.mubr.msk.bf16.mxu0 %vm853_vm0, %v852_v0  ;;  %804 = vmatprep.mubr.msk.bf16.mxu1 %vm853_vm0, %v852_v0 }
  0x56   :  { %753 = vmatmul.mubr.msk.bf16.gmra.mrb[36].mxu0 %vm218_vm1, %v845_v22  ;;  %805 = vmatmul.mubr.msk.bf16.gmra.mrb[36].mxu1 %vm218_vm1, %v846_v23 }
  0x57   :  { %756 = vmatprep.mubr.msk.bf16.mxu0 %vm853_vm0, %v852_v0  ;;  %808 = vmatprep.mubr.msk.bf16.mxu1 %vm853_vm0, %v852_v0 }
  0x5e   :  { %757 = vmatmul.mubr.msk.bf16.gmra.mrb[40].mxu0 %vm218_vm1, %v847_v24  ;;  %809 = vmatmul.mubr.msk.bf16.gmra.mrb[40].mxu1 %vm218_vm1, %v848_v25 }
  0x5f   :  { %760 = vmatprep.mubr.msk.bf16.mxu0 %vm853_vm0, %v852_v0  ;;  %812 = vmatprep.mubr.msk.bf16.mxu1 %vm853_vm0, %v852_v0 }
  0x66   :  { %761 = vmatmul.mubr.msk.bf16.gmra.mrb[44].mxu0 %vm218_vm1, %v849_v26  ;;  %813 = vmatmul.mubr.msk.bf16.gmra.mrb[44].mxu1 %vm218_vm1, %v850_v27 }
  0x67   :  { %764 = vmatprep.mubr.msk.bf16.mxu0 %vm853_vm0, %v852_v0 }
  0x6e   :  { %765 = vmatmul.mubr.msk.bf16.gmra.mrb[48].mxu0 %vm218_vm1, %v851_v28 }
  0xe1   :  { %v328_v30 = vpop.f32.mrb[0].mxu0  ;;  %v432_v31 = vpop.f32.mrb[0].mxu1 }
  0xe2   :  { %v329_v32 = vadd.f32 %v1042_v29, %v328_v30  ;;  %v718_v33 = vpop.f32.mrb[1].mxu0  ;;  %v433_v34 = vadd.f32 %v1042_v29, %v432_v31  ;;  %v770_v35 = vpop.f32.mrb[1].mxu1 }
  0xe3   :  { %v331_v36 = vpop.f32.mrb[2].mxu0  ;;  %v435_v37 = vpop.f32.mrb[2].mxu1 }
  0xe4   :  { %v526_v38 = vmax.f32 %v329_v32, 0.0  ;;  %v332_v39 = vadd.f32 %v1042_v29, %v331_v36  ;;  %v719_v40 = vpop.f32.mrb[3].mxu0  ;;  %v552_v41 = vmax.f32 %v433_v34, 0.0  ;;  %v436_v42 = vadd.f32 %v1042_v29, %v435_v37  ;;  %v771_v43 = vpop.f32.mrb[3].mxu1 }
  0xe6   :  { %575 = vst [vmem:[%s1243_s3] sm:$0xff] %v526_v38  ;;  %v527_v44 = vmax.f32 %v332_v39, 0.0  ;;  %601 = vst [vmem:[%s1243_s3 + $0xd0] sm:$0xff] %v552_v41  ;;  %v553_v45 = vmax.f32 %v436_v42, 0.0 }
  0xe8   :  { %576 = vst [vmem:[%s1243_s3 + $0x8] sm:$0xff] %v527_v44  ;;  %602 = vst [vmem:[%s1243_s3 + $0xd8] sm:$0xff] %v553_v45 }
  0xe9   :  { %v336_v46 = vpop.f32.mrb[4].mxu0  ;;  %v440_v47 = vpop.f32.mrb[4].mxu1 }
  0xea   :  { %v337_v48 = vadd.f32 %v1042_v29, %v336_v46  ;;  %v722_v49 = vpop.f32.mrb[5].mxu0  ;;  %v441_v50 = vadd.f32 %v1042_v29, %v440_v47  ;;  %v774_v51 = vpop.f32.mrb[5].mxu1 }
  0xeb   :  { %v339_v52 = vpop.f32.mrb[6].mxu0  ;;  %v443_v53 = vpop.f32.mrb[6].mxu1 }
  0xec   :  { %v528_v54 = vmax.f32 %v337_v48, 0.0  ;;  %v340_v55 = vadd.f32 %v1042_v29, %v339_v52  ;;  %v723_v56 = vpop.f32.mrb[7].mxu0  ;;  %v554_v57 = vmax.f32 %v441_v50, 0.0  ;;  %v444_v58 = vadd.f32 %v1042_v29, %v443_v53  ;;  %v775_v59 = vpop.f32.mrb[7].mxu1 }
  0xee   :  { %577 = vst [vmem:[%s1243_s3 + $0x10] sm:$0xff] %v528_v54  ;;  %v529_v60 = vmax.f32 %v340_v55, 0.0  ;;  %603 = vst [vmem:[%s1243_s3 + $0xe0] sm:$0xff] %v554_v57  ;;  %v555_v61 = vmax.f32 %v444_v58, 0.0 }
  0xf0   :  { %578 = vst [vmem:[%s1243_s3 + $0x18] sm:$0xff] %v529_v60  ;;  %604 = vst [vmem:[%s1243_s3 + $0xe8] sm:$0xff] %v555_v61 }
  0xf1   :  { %v344_v62 = vpop.f32.mrb[8].mxu0  ;;  %v448_v63 = vpop.f32.mrb[8].mxu1 }
  0xf2   :  { %v345_v0 = vadd.f32 %v1042_v29, %v344_v62  ;;  %v726_v1 = vpop.f32.mrb[9].mxu0  ;;  %v449_v2 = vadd.f32 %v1042_v29, %v448_v63  ;;  %v778_v3 = vpop.f32.mrb[9].mxu1 }
  0xf3   :  { %v347_v4 = vpop.f32.mrb[10].mxu0  ;;  %v451_v5 = vpop.f32.mrb[10].mxu1 }
  0xf4   :  { %v530_v6 = vmax.f32 %v345_v0, 0.0  ;;  %v348_v7 = vadd.f32 %v1042_v29, %v347_v4  ;;  %v727_v8 = vpop.f32.mrb[11].mxu0  ;;  %v556_v9 = vmax.f32 %v449_v2, 0.0  ;;  %v452_v10 = vadd.f32 %v1042_v29, %v451_v5  ;;  %v779_v11 = vpop.f32.mrb[11].mxu1 }
  0xf6   :  { %579 = vst [vmem:[%s1243_s3 + $0x20] sm:$0xff] %v530_v6  ;;  %v531_v12 = vmax.f32 %v348_v7, 0.0  ;;  %605 = vst [vmem:[%s1243_s3 + $0xf0] sm:$0xff] %v556_v9  ;;  %v557_v13 = vmax.f32 %v452_v10, 0.0 }
  0xf8   :  { %580 = vst [vmem:[%s1243_s3 + $0x28] sm:$0xff] %v531_v12  ;;  %606 = vst [vmem:[%s1243_s3 + $0xf8] sm:$0xff] %v557_v13 }
  0xf9   :  { %v352_v14 = vpop.f32.mrb[12].mxu0  ;;  %v456_v15 = vpop.f32.mrb[12].mxu1 }
  0xfa   :  { %v353_v16 = vadd.f32 %v1042_v29, %v352_v14  ;;  %v730_v17 = vpop.f32.mrb[13].mxu0  ;;  %v457_v18 = vadd.f32 %v1042_v29, %v456_v15  ;;  %v782_v19 = vpop.f32.mrb[13].mxu1 }
  0xfb   :  { %v355_v20 = vpop.f32.mrb[14].mxu0  ;;  %v459_v21 = vpop.f32.mrb[14].mxu1 }
  0xfc   :  { %v532_v22 = vmax.f32 %v353_v16, 0.0  ;;  %v356_v23 = vadd.f32 %v1042_v29, %v355_v20  ;;  %v731_v24 = vpop.f32.mrb[15].mxu0  ;;  %v558_v25 = vmax.f32 %v457_v18, 0.0  ;;  %v460_v26 = vadd.f32 %v1042_v29, %v459_v21  ;;  %v783_v27 = vpop.f32.mrb[15].mxu1 }
  0xfe   :  { %581 = vst [vmem:[%s1243_s3 + $0x30] sm:$0xff] %v532_v22  ;;  %v533_v28 = vmax.f32 %v356_v23, 0.0  ;;  %607 = vst [vmem:[%s1243_s3 + $0x100] sm:$0xff] %v558_v25  ;;  %v559_v30 = vmax.f32 %v460_v26, 0.0 }
 0x100   :  { %582 = vst [vmem:[%s1243_s3 + $0x38] sm:$0xff] %v533_v28  ;;  %608 = vst [vmem:[%s1243_s3 + $0x108] sm:$0xff] %v559_v30 }
 0x101   :  { %v360_v31 = vpop.f32.mrb[16].mxu0  ;;  %v464_v32 = vpop.f32.mrb[16].mxu1 }
 0x102   :  { %v361_v33 = vadd.f32 %v1042_v29, %v360_v31  ;;  %v734_v34 = vpop.f32.mrb[17].mxu0  ;;  %v465_v35 = vadd.f32 %v1042_v29, %v464_v32  ;;  %v786_v36 = vpop.f32.mrb[17].mxu1 }
 0x103   :  { %v363_v37 = vpop.f32.mrb[18].mxu0  ;;  %v467_v38 = vpop.f32.mrb[18].mxu1 }
 0x104   :  { %v534_v39 = vmax.f32 %v361_v33, 0.0  ;;  %v364_v40 = vadd.f32 %v1042_v29, %v363_v37  ;;  %v735_v41 = vpop.f32.mrb[19].mxu0  ;;  %v560_v42 = vmax.f32 %v465_v35, 0.0  ;;  %v468_v43 = vadd.f32 %v1042_v29, %v467_v38  ;;  %v787_v44 = vpop.f32.mrb[19].mxu1 }
 0x106   :  { %583 = vst [vmem:[%s1243_s3 + $0x40] sm:$0xff] %v534_v39  ;;  %v535_v45 = vmax.f32 %v364_v40, 0.0  ;;  %609 = vst [vmem:[%s1243_s3 + $0x110] sm:$0xff] %v560_v42  ;;  %v561_v46 = vmax.f32 %v468_v43, 0.0 }
 0x108   :  { %584 = vst [vmem:[%s1243_s3 + $0x48] sm:$0xff] %v535_v45  ;;  %610 = vst [vmem:[%s1243_s3 + $0x118] sm:$0xff] %v561_v46 }
 0x109   :  { %v368_v47 = vpop.f32.mrb[20].mxu0  ;;  %v472_v48 = vpop.f32.mrb[20].mxu1 }
 0x10a   :  { %v369_v49 = vadd.f32 %v1042_v29, %v368_v47  ;;  %v738_v50 = vpop.f32.mrb[21].mxu0  ;;  %v473_v51 = vadd.f32 %v1042_v29, %v472_v48  ;;  %v790_v52 = vpop.f32.mrb[21].mxu1 }
 0x10b   :  { %v371_v53 = vpop.f32.mrb[22].mxu0  ;;  %v475_v54 = vpop.f32.mrb[22].mxu1 }
 0x10c   :  { %v536_v55 = vmax.f32 %v369_v49, 0.0  ;;  %v372_v56 = vadd.f32 %v1042_v29, %v371_v53  ;;  %v739_v57 = vpop.f32.mrb[23].mxu0  ;;  %v562_v58 = vmax.f32 %v473_v51, 0.0  ;;  %v476_v59 = vadd.f32 %v1042_v29, %v475_v54  ;;  %v791_v60 = vpop.f32.mrb[23].mxu1 }
 0x10e   :  { %585 = vst [vmem:[%s1243_s3 + $0x50] sm:$0xff] %v536_v55  ;;  %v537_v61 = vmax.f32 %v372_v56, 0.0  ;;  %611 = vst [vmem:[%s1243_s3 + $0x120] sm:$0xff] %v562_v58  ;;  %v563_v62 = vmax.f32 %v476_v59, 0.0 }
 0x110   :  { %586 = vst [vmem:[%s1243_s3 + $0x58] sm:$0xff] %v537_v61  ;;  %612 = vst [vmem:[%s1243_s3 + $0x128] sm:$0xff] %v563_v62 }
 0x111   :  { %v376_v63 = vpop.f32.mrb[24].mxu0  ;;  %v480_v0 = vpop.f32.mrb[24].mxu1 }
 0x112   :  { %v377_v1 = vadd.f32 %v1042_v29, %v376_v63  ;;  %v742_v2 = vpop.f32.mrb[25].mxu0  ;;  %v481_v3 = vadd.f32 %v1042_v29, %v480_v0  ;;  %v794_v4 = vpop.f32.mrb[25].mxu1 }
 0x113   :  { %v379_v5 = vpop.f32.mrb[26].mxu0  ;;  %v483_v6 = vpop.f32.mrb[26].mxu1 }
 0x114   :  { %v538_v7 = vmax.f32 %v377_v1, 0.0  ;;  %v380_v8 = vadd.f32 %v1042_v29, %v379_v5  ;;  %v743_v9 = vpop.f32.mrb[27].mxu0  ;;  %v564_v10 = vmax.f32 %v481_v3, 0.0  ;;  %v484_v11 = vadd.f32 %v1042_v29, %v483_v6  ;;  %v795_v12 = vpop.f32.mrb[27].mxu1 }
 0x116   :  { %587 = vst [vmem:[%s1243_s3 + $0x60] sm:$0xff] %v538_v7  ;;  %v539_v13 = vmax.f32 %v380_v8, 0.0  ;;  %613 = vst [vmem:[%s1243_s3 + $0x130] sm:$0xff] %v564_v10  ;;  %v565_v14 = vmax.f32 %v484_v11, 0.0 }
 0x118   :  { %588 = vst [vmem:[%s1243_s3 + $0x68] sm:$0xff] %v539_v13  ;;  %614 = vst [vmem:[%s1243_s3 + $0x138] sm:$0xff] %v565_v14 }
 0x119   :  { %v384_v15 = vpop.f32.mrb[28].mxu0  ;;  %v488_v16 = vpop.f32.mrb[28].mxu1 }
 0x11a   :  { %v385_v17 = vadd.f32 %v1042_v29, %v384_v15  ;;  %v746_v18 = vpop.f32.mrb[29].mxu0  ;;  %v489_v19 = vadd.f32 %v1042_v29, %v488_v16  ;;  %v798_v20 = vpop.f32.mrb[29].mxu1 }
 0x11b   :  { %v387_v21 = vpop.f32.mrb[30].mxu0  ;;  %v491_v22 = vpop.f32.mrb[30].mxu1 }
 0x11c   :  { %v540_v23 = vmax.f32 %v385_v17, 0.0  ;;  %v388_v24 = vadd.f32 %v1042_v29, %v387_v21  ;;  %v747_v25 = vpop.f32.mrb[31].mxu0  ;;  %v566_v26 = vmax.f32 %v489_v19, 0.0  ;;  %v492_v27 = vadd.f32 %v1042_v29, %v491_v22  ;;  %v799_v28 = vpop.f32.mrb[31].mxu1 }
 0x11e   :  { %589 = vst [vmem:[%s1243_s3 + $0x70] sm:$0xff] %v540_v23  ;;  %v541_v30 = vmax.f32 %v388_v24, 0.0  ;;  %615 = vst [vmem:[%s1243_s3 + $0x140] sm:$0xff] %v566_v26  ;;  %v567_v31 = vmax.f32 %v492_v27, 0.0 }
 0x120   :  { %590 = vst [vmem:[%s1243_s3 + $0x78] sm:$0xff] %v541_v30  ;;  %616 = vst [vmem:[%s1243_s3 + $0x148] sm:$0xff] %v567_v31 }
 0x121   :  { %v392_v32 = vpop.f32.mrb[32].mxu0  ;;  %v496_v33 = vpop.f32.mrb[32].mxu1 }
 0x122   :  { %v393_v34 = vadd.f32 %v1042_v29, %v392_v32  ;;  %v750_v35 = vpop.f32.mrb[33].mxu0  ;;  %v497_v36 = vadd.f32 %v1042_v29, %v496_v33  ;;  %v802_v37 = vpop.f32.mrb[33].mxu1 }
 0x123   :  { %v395_v38 = vpop.f32.mrb[34].mxu0  ;;  %v499_v39 = vpop.f32.mrb[34].mxu1 }
 0x124   :  { %v542_v40 = vmax.f32 %v393_v34, 0.0  ;;  %v396_v41 = vadd.f32 %v1042_v29, %v395_v38  ;;  %v751_v42 = vpop.f32.mrb[35].mxu0  ;;  %v568_v43 = vmax.f32 %v497_v36, 0.0  ;;  %v500_v44 = vadd.f32 %v1042_v29, %v499_v39  ;;  %v803_v45 = vpop.f32.mrb[35].mxu1 }
 0x126   :  { %591 = vst [vmem:[%s1243_s3 + $0x80] sm:$0xff] %v542_v40  ;;  %v543_v46 = vmax.f32 %v396_v41, 0.0  ;;  %617 = vst [vmem:[%s1243_s3 + $0x150] sm:$0xff] %v568_v43  ;;  %v569_v47 = vmax.f32 %v500_v44, 0.0 }
 0x128   :  { %592 = vst [vmem:[%s1243_s3 + $0x88] sm:$0xff] %v543_v46  ;;  %618 = vst [vmem:[%s1243_s3 + $0x158] sm:$0xff] %v569_v47 }
 0x129   :  { %v400_v48 = vpop.f32.mrb[36].mxu0  ;;  %v504_v49 = vpop.f32.mrb[36].mxu1 }
 0x12a   :  { %v401_v50 = vadd.f32 %v1042_v29, %v400_v48  ;;  %v754_v51 = vpop.f32.mrb[37].mxu0  ;;  %v505_v52 = vadd.f32 %v1042_v29, %v504_v49  ;;  %v806_v53 = vpop.f32.mrb[37].mxu1 }
 0x12b   :  { %v403_v54 = vpop.f32.mrb[38].mxu0  ;;  %v507_v55 = vpop.f32.mrb[38].mxu1 }
 0x12c   :  { %v544_v56 = vmax.f32 %v401_v50, 0.0  ;;  %v404_v57 = vadd.f32 %v1042_v29, %v403_v54  ;;  %v755_v58 = vpop.f32.mrb[39].mxu0  ;;  %v570_v59 = vmax.f32 %v505_v52, 0.0  ;;  %v508_v60 = vadd.f32 %v1042_v29, %v507_v55  ;;  %v807_v61 = vpop.f32.mrb[39].mxu1 }
 0x12e   :  { %593 = vst [vmem:[%s1243_s3 + $0x90] sm:$0xff] %v544_v56  ;;  %v545_v62 = vmax.f32 %v404_v57, 0.0  ;;  %619 = vst [vmem:[%s1243_s3 + $0x160] sm:$0xff] %v570_v59  ;;  %v571_v63 = vmax.f32 %v508_v60, 0.0 }
 0x130   :  { %594 = vst [vmem:[%s1243_s3 + $0x98] sm:$0xff] %v545_v62  ;;  %620 = vst [vmem:[%s1243_s3 + $0x168] sm:$0xff] %v571_v63 }
 0x131   :  { %v408_v0 = vpop.f32.mrb[40].mxu0  ;;  %v512_v1 = vpop.f32.mrb[40].mxu1 }
 0x132   :  { %v409_v2 = vadd.f32 %v1042_v29, %v408_v0  ;;  %v758_v3 = vpop.f32.mrb[41].mxu0  ;;  %v513_v4 = vadd.f32 %v1042_v29, %v512_v1  ;;  %v810_v5 = vpop.f32.mrb[41].mxu1 }
 0x133   :  { %v411_v6 = vpop.f32.mrb[42].mxu0  ;;  %v515_v7 = vpop.f32.mrb[42].mxu1 }
 0x134   :  { %v546_v8 = vmax.f32 %v409_v2, 0.0  ;;  %v412_v9 = vadd.f32 %v1042_v29, %v411_v6  ;;  %v759_v10 = vpop.f32.mrb[43].mxu0  ;;  %v572_v11 = vmax.f32 %v513_v4, 0.0  ;;  %v516_v12 = vadd.f32 %v1042_v29, %v515_v7  ;;  %v811_v13 = vpop.f32.mrb[43].mxu1 }
 0x136   :  { %595 = vst [vmem:[%s1243_s3 + $0xa0] sm:$0xff] %v546_v8  ;;  %v547_v14 = vmax.f32 %v412_v9, 0.0  ;;  %621 = vst [vmem:[%s1243_s3 + $0x170] sm:$0xff] %v572_v11  ;;  %v573_v15 = vmax.f32 %v516_v12, 0.0 }
 0x138   :  { %596 = vst [vmem:[%s1243_s3 + $0xa8] sm:$0xff] %v547_v14  ;;  %622 = vst [vmem:[%s1243_s3 + $0x178] sm:$0xff] %v573_v15 }
 0x139   :  { %v416_v16 = vpop.f32.mrb[44].mxu0  ;;  %v520_v17 = vpop.f32.mrb[44].mxu1 }
 0x13a   :  { %v417_v18 = vadd.f32 %v1042_v29, %v416_v16  ;;  %v762_v19 = vpop.f32.mrb[45].mxu0  ;;  %v521_v20 = vadd.f32 %v1042_v29, %v520_v17  ;;  %v814_v21 = vpop.f32.mrb[45].mxu1 }
 0x13b   :  { %v419_v22 = vpop.f32.mrb[46].mxu0  ;;  %v523_v23 = vpop.f32.mrb[46].mxu1 }
 0x13c   :  { %v548_v24 = vmax.f32 %v417_v18, 0.0  ;;  %v420_v25 = vadd.f32 %v1042_v29, %v419_v22  ;;  %v763_v26 = vpop.f32.mrb[47].mxu0  ;;  %v574_v27 = vmax.f32 %v521_v20, 0.0  ;;  %v815_v28 = vpop.f32.mrb[47].mxu1 }
 0x13e   :  { %597 = vst [vmem:[%s1243_s3 + $0xb0] sm:$0xff] %v548_v24  ;;  %v549_v30 = vmax.f32 %v420_v25, 0.0  ;;  %623 = vst [vmem:[%s1243_s3 + $0x180] sm:$0xff] %v574_v27 }
 0x140   :  { %598 = vst [vmem:[%s1243_s3 + $0xb8] sm:$0xff] %v549_v30 }
 0x141   :  { %v424_v31 = vpop.f32.mrb[48].mxu0 }
 0x142   :  { %v425_v32 = vadd.f32 %v1042_v29, %v424_v31  ;;  %v766_v33 = vpop.f32.mrb[49].mxu0 }
 0x143   :  { %v427_v34 = vpop.f32.mrb[50].mxu0 }
 0x144   :  { %v550_v35 = vmax.f32 %v425_v32, 0.0  ;;  %v428_v36 = vadd.f32 %v1042_v29, %v427_v34  ;;  %v767_v37 = vpop.f32.mrb[51].mxu0 }
 0x146   :  { %599 = vst [vmem:[%s1243_s3 + $0xc0] sm:$0xff] %v550_v35  ;;  %v551_v38 = vmax.f32 %v428_v36, 0.0 }
 0x148   :  { %600 = vst [vmem:[%s1243_s3 + $0xc8] sm:$0xff] %v551_v38 }

</bundles_post_ra>
